<compile_context>
chip_gen: v6e
topology: v6e:2x2x1
jax: 0.10.0
libtpu: 0.0.40
codegen_flags: <defaults>
</compile_context>

<pallas_src>
import functools

import jax
import jax.numpy as jnp
import numpy as np
from jax.experimental import pallas as pl
from jax.experimental.pallas import tpu as pltpu


# ------------------------------ fused kernel -------------------------------

def _fused_self_attention_kernel(
    sp_ref,                        # (1,) int32 SMEM : start_pos (runtime scalar)
    x_ref,                         # (S, D) bf16
    wqkv_ref,                      # (D, 2*kv_pad + D) bf16 : [wk_pad | wv_pad | wq*scale]
    wo_ref,                        # (D, D) bf16 (wo.T)
    cos_ref, sine_ref, sino_ref,   # (S, kv_pad) f32 rotary tables
    kc_hbm, vc_hbm,                # (max_batch, max_seq, d_kv) f32, HBM (pl.ANY)
    out_ref,                       # (S, D) f32
    kc_out_hbm, vc_out_hbm,        # aliased with kc_hbm / vc_hbm
    k_scratch, v_scratch,          # (max_seq, d_kv) f32 VMEM
    y_scratch,                     # (S, D) f32 VMEM
    sem,                           # DMA semaphores (4,)
    *, n_heads, n_kv_heads,
):
    S, D = x_ref.shape
    head_dim = D // n_heads
    d_kv = n_kv_heads * head_dim
    kv_pad = cos_ref.shape[-1]
    max_seq = k_scratch.shape[0]
    n_rep = n_heads // n_kv_heads

    b = pl.program_id(0)
    start_pos = sp_ref[0]
    total = start_pos + S

    # 1) Kick off the cache-row reads (HBM -> VMEM) so they overlap the matmul.
    k_read = pltpu.make_async_copy(kc_hbm.at[b], k_scratch, sem.at[0])
    v_read = pltpu.make_async_copy(vc_hbm.at[b], v_scratch, sem.at[1])
    k_read.start()
    v_read.start()

    # 2) Fused QKV projection: one bf16 MXU pass (q scale folded into the weight).
    qkv = jnp.dot(x_ref[...], wqkv_ref[...], preferred_element_type=jnp.float32)
    k_pad = qkv[:, :kv_pad]                       # (S, kv_pad), zero beyond d_kv
    v_pad = qkv[:, kv_pad:2 * kv_pad]             # (S, kv_pad)
    q = qkv[:, 2 * kv_pad:]                       # (S, D), already * head_dim**-0.5

    # 3) Rotary on K and V (the reference module rotates V too; no causal mask).
    #    Interleaved complex multiply via lane rolls (XLU) + signed sin tables.
    def rotary(t):
        right = pltpu.roll(t, shift=kv_pad - 1, axis=1)   # t[:, j + 1]
        left = pltpu.roll(t, shift=1, axis=1)             # t[:, j - 1]
        return t * cos_ref[...] + right * sine_ref[...] + left * sino_ref[...]

    k_rot = rotary(k_pad)[:, :d_kv]               # (S, d_kv) f32
    v_rot = rotary(v_pad)[:, :d_kv]

    # 4) Splice the S new rows into the resident copy; write back ONLY those rows.
    k_read.wait()
    v_read.wait()
    k_scratch[pl.ds(start_pos, S), :] = k_rot
    v_scratch[pl.ds(start_pos, S), :] = v_rot
    k_wb = pltpu.make_async_copy(
        k_scratch.at[pl.ds(start_pos, S), :],
        kc_out_hbm.at[b, pl.ds(start_pos, S), :], sem.at[2])
    v_wb = pltpu.make_async_copy(
        v_scratch.at[pl.ds(start_pos, S), :],
        vc_out_hbm.at[b, pl.ds(start_pos, S), :], sem.at[3])
    k_wb.start()
    v_wb.start()

    # 5) GQA attention over the [0, total) prefix (tail masked), bf16 MXU
    #    operands, f32 softmax.  Head h uses KV head h // n_rep (no repeat).
    keys = k_scratch[...].astype(jnp.bfloat16)    # (max_seq, d_kv)
    vals = v_scratch[...].astype(jnp.bfloat16)
    q_b = q.astype(jnp.bfloat16)
    t_idx = jax.lax.broadcasted_iota(jnp.int32, (S, max_seq), 1)
    mask_add = jnp.where(t_idx < total, 0.0, -1e30).astype(jnp.float32)

    for g in range(n_kv_heads):                   # static, fully unrolled
        k_g = keys[:, g * head_dim:(g + 1) * head_dim]
        v_g = vals[:, g * head_dim:(g + 1) * head_dim]
        for r in range(n_rep):
            h = g * n_rep + r
            q_h = q_b[:, h * head_dim:(h + 1) * head_dim]
            s = jax.lax.dot_general(
                q_h, k_g, dimension_numbers=(((1,), (1,)), ((), ())),
                preferred_element_type=jnp.float32) + mask_add
            m = jnp.max(s, axis=-1, keepdims=True)
            p = jnp.exp(s - m)
            p = p * pl.reciprocal(jnp.sum(p, axis=-1, keepdims=True), approx=True)
            y_scratch[:, h * head_dim:(h + 1) * head_dim] = jnp.dot(
                p.astype(jnp.bfloat16), v_g, preferred_element_type=jnp.float32)

    # 6) Single output projection (one big contraction over D instead of
    #    n_heads under-filled head_dim-contraction dots).
    out_ref[...] = jnp.dot(
        y_scratch[...].astype(jnp.bfloat16), wo_ref[...],
        preferred_element_type=jnp.float32).astype(out_ref.dtype)

    # 7) Cache write-back must land before this grid step retires.
    k_wb.wait()
    v_wb.wait()


# ------------------------------ host wrapper --------------------------------

@functools.partial(jax.jit, static_argnames=("n_heads", "n_kv_heads"),
                   donate_argnums=(5, 6))
def self_attention_forward(params, x, start_pos, cos, sin, k_cache, v_cache,
                           *, n_heads, n_kv_heads):
    B, S, D = x.shape
    head_dim = D // n_heads
    d_kv = n_kv_heads * head_dim
    max_batch, max_seq = k_cache.shape[0], k_cache.shape[1]
    kv_pad = ((d_kv + 127) // 128) * 128      # lane-pad K/V so rolls act on 128 lanes
    pad_cols = kv_pad - d_kv
    scale = head_dim ** (-0.5)

    # One-time weight / positional prep (cached at init in a real model).
    wqkv = jnp.concatenate([
        jnp.pad(params["wk"].T, ((0, 0), (0, pad_cols))),
        jnp.pad(params["wv"].T, ((0, 0), (0, pad_cols))),
        params["wq"].T * scale,                # fold 1/sqrt(head_dim) into wq
    ], axis=1).astype(jnp.bfloat16)            # (D, 2*kv_pad + D)
    wo_t = params["wo"].T.astype(jnp.bfloat16)

    # Rotary tables, interleaved layout, tiled across KV heads, lane-padded.
    cos2 = jnp.repeat(cos, 2, axis=1)          # (S, head_dim): c0 c0 c1 c1 ...
    sin2 = jnp.repeat(sin, 2, axis=1)
    odd = (jnp.arange(head_dim) % 2).astype(jnp.float32)
    sin_e1 = -sin2 * (1.0 - odd)               # -sin at even lanes, 0 at odd
    sin_o1 = sin2 * odd                        # +sin at odd lanes, 0 at even
    cos_t = jnp.pad(jnp.tile(cos2, (1, n_kv_heads)), ((0, 0), (0, pad_cols)))
    sin_e = jnp.pad(jnp.tile(sin_e1, (1, n_kv_heads)), ((0, 0), (0, pad_cols)))
    sin_o = jnp.pad(jnp.tile(sin_o1, (1, n_kv_heads)), ((0, 0), (0, pad_cols)))

    kc3 = k_cache.reshape(max_batch, max_seq, d_kv)
    vc3 = v_cache.reshape(max_batch, max_seq, d_kv)
    x_bf = x.astype(jnp.bfloat16)
    sp = jnp.asarray(start_pos, dtype=jnp.int32).reshape(1)

    kern = functools.partial(_fused_self_attention_kernel,
                             n_heads=n_heads, n_kv_heads=n_kv_heads)

    out, kc3_new, vc3_new = pl.pallas_call(
        kern,
        grid=(B,),
        in_specs=[
            pl.BlockSpec(memory_space=pltpu.MemorySpace.SMEM),           # start_pos
            pl.BlockSpec((None, S, D), lambda b: (b, 0, 0)),             # x (bf16)
            pl.BlockSpec((D, 2 * kv_pad + D), lambda b: (0, 0)),         # fused weight
            pl.BlockSpec((D, D), lambda b: (0, 0)),                      # wo.T
            pl.BlockSpec((S, kv_pad), lambda b: (0, 0)),                 # cos table
            pl.BlockSpec((S, kv_pad), lambda b: (0, 0)),                 # -sin @ even
            pl.BlockSpec((S, kv_pad), lambda b: (0, 0)),                 # +sin @ odd
            pl.BlockSpec(memory_space=pl.ANY),                           # k cache (HBM)
            pl.BlockSpec(memory_space=pl.ANY),                           # v cache (HBM)
        ],
        out_specs=(
            pl.BlockSpec((None, S, D), lambda b: (b, 0, 0)),
            pl.BlockSpec(memory_space=pl.ANY),
            pl.BlockSpec(memory_space=pl.ANY),
        ),
        out_shape=(
            jax.ShapeDtypeStruct((B, S, D), jnp.float32),
            jax.ShapeDtypeStruct((max_batch, max_seq, d_kv), k_cache.dtype),
            jax.ShapeDtypeStruct((max_batch, max_seq, d_kv), v_cache.dtype),
        ),
        scratch_shapes=[
            pltpu.VMEM((max_seq, d_kv), jnp.float32),
            pltpu.VMEM((max_seq, d_kv), jnp.float32),
            pltpu.VMEM((S, D), jnp.float32),
            pltpu.SemaphoreType.DMA((4,)),
        ],
        input_output_aliases={7: 1, 8: 2},       # KV caches updated in place
        compiler_params=pltpu.CompilerParams(
            dimension_semantics=("parallel",)),
    )(sp, x_bf, wqkv, wo_t, cos_t, sin_e, sin_o, kc3, vc3)

    return (out,
            kc3_new.reshape(k_cache.shape),
            vc3_new.reshape(v_cache.shape))


# --------------------------- pure-JAX reference -----------------------------

def _rotary_ref(x, cos, sin):
    # x: (B, S, H, Dh); cos/sin: (S, Dh//2). Complex multiply on (even, odd) pairs.
    xr = x.reshape(*x.shape[:-1], -1, 2)
    x0, x1 = xr[..., 0], xr[..., 1]
    c = cos[None, :, None, :]
    s = sin[None, :, None, :]
    return jnp.stack([x0 * c - x1 * s, x0 * s + x1 * c], axis=-1).reshape(x.shape)


def reference_forward(params, x, start_pos, cos, sin, k_cache, v_cache,
                      n_heads, n_kv_heads):
    """Mirrors the PyTorch forward exactly (rotary on K AND V, no causal mask)."""
    B, S, D = x.shape
    head_dim = D // n_heads
    n_rep = n_heads // n_kv_heads
    xq = (x @ params["wq"].T).reshape(B, S, n_heads, head_dim)
    xk = (x @ params["wk"].T).reshape(B, S, n_kv_heads, head_dim)
    xv = (x @ params["wv"].T).reshape(B, S, n_kv_heads, head_dim)
    xk = _rotary_ref(xk, cos, sin)
    xv = _rotary_ref(xv, cos, sin)
    k_cache = jax.lax.dynamic_update_slice(k_cache, xk, (0, start_pos, 0, 0))
    v_cache = jax.lax.dynamic_update_slice(v_cache, xv, (0, start_pos, 0, 0))
    T = start_pos + S
    keys = jnp.repeat(k_cache[:B, :T], n_rep, axis=2).transpose(0, 2, 1, 3)
    vals = jnp.repeat(v_cache[:B, :T], n_rep, axis=2).transpose(0, 2, 1, 3)
    q = xq.transpose(0, 2, 1, 3)
    att = jnp.einsum("bhsd,bhtd->bhst", q, keys) * head_dim ** (-0.5)
    att = jax.nn.softmax(att, axis=-1)
    y = jnp.einsum("bhst,bhtd->bhsd", att, vals)
    y = y.transpose(0, 2, 1, 3).reshape(B, S, D)
    return y @ params["wo"].T, k_cache, v_cache


# ---------------------------------- main -------------------------------------

if __name__ == "__main__":
    B, S, D = 2, 8, 32
    n_heads, n_kv_heads = 4, 2
    head_dim = D // n_heads            # 8
    d_kv = n_kv_heads * head_dim       # 16
    max_batch, max_seq = 4, 16         # max_batch > B: untouched cache rows preserved
    start_pos = 4                      # runtime scalar (not baked into the kernel)

    key = jax.random.PRNGKey(0)
    kx, kq, kk, kv, ko, kkc, kvc = jax.random.split(key, 7)
    x = jax.random.normal(kx, (B, S, D), dtype=jnp.float32)
    params = {
        "wq": 0.05 * jax.random.normal(kq, (D, D), dtype=jnp.float32),
        "wk": 0.05 * jax.random.normal(kk, (d_kv, D), dtype=jnp.float32),
        "wv": 0.05 * jax.random.normal(kv, (d_kv, D), dtype=jnp.float32),
        "wo": 0.05 * jax.random.normal(ko, (D, D), dtype=jnp.float32),
    }

    # theta_cis (complex rotary phases) as cos/sin for positions [start_pos, start_pos+S)
    half = head_dim // 2
    freqs = 1.0 / (10000.0 ** (jnp.arange(0, half, dtype=jnp.float32) / half))
    pos = jnp.arange(start_pos, start_pos + S, dtype=jnp.float32)
    angles = pos[:, None] * freqs[None, :]
    cos, sin = jnp.cos(angles), jnp.sin(angles)

    # Cache state from earlier decode steps (random so the [0, start_pos) read
    # path and the untouched-row path are exercised).
    k_cache = 0.1 * jax.random.normal(
        kkc, (max_batch, max_seq, n_kv_heads, head_dim), dtype=jnp.float32)
    v_cache = 0.1 * jax.random.normal(
        kvc, (max_batch, max_seq, n_kv_heads, head_dim), dtype=jnp.float32)

    # Reference first: the caches are donated to the jitted kernel call below.
    ref_out, ref_kc, ref_vc = reference_forward(
        params, x, start_pos, cos, sin, k_cache, v_cache, n_heads, n_kv_heads)

    out, kc_new, vc_new = self_attention_forward(
        params, x, start_pos, cos, sin, k_cache, v_cache,
        n_heads=n_heads, n_kv_heads=n_kv_heads)
    jax.block_until_ready((out, kc_new, vc_new))

    np.testing.assert_allclose(np.asarray(out), np.asarray(ref_out), atol=5e-3, rtol=2e-2)
    np.testing.assert_allclose(np.asarray(kc_new), np.asarray(ref_kc), atol=5e-3, rtol=2e-2)
    np.testing.assert_allclose(np.asarray(vc_new), np.asarray(ref_vc), atol=5e-3, rtol=2e-2)
    print("KERNEL_OK")
</pallas_src>

<mosaic_0001>
module attributes {stable_mosaic.version = 11 : i64} {
  func.func @_fused_self_attention_kernel(%arg0: i32, %arg1: memref<1xi32, #tpu.memory_space<smem>>, %arg2: memref<1x8x32xbf16, #tpu.memory_space<vmem>>, %arg3: memref<32x288xbf16, #tpu.memory_space<vmem>>, %arg4: memref<32x32xbf16, #tpu.memory_space<vmem>>, %arg5: memref<8x128xf32, #tpu.memory_space<vmem>>, %arg6: memref<8x128xf32, #tpu.memory_space<vmem>>, %arg7: memref<8x128xf32, #tpu.memory_space<vmem>>, %arg8: memref<4x16x16xf32, #tpu.memory_space<any>>, %arg9: memref<4x16x16xf32, #tpu.memory_space<any>>, %arg10: memref<1x8x32xf32, #tpu.memory_space<vmem>>, %arg11: memref<4x16x16xf32, #tpu.memory_space<any>>, %arg12: memref<4x16x16xf32, #tpu.memory_space<any>>, %arg13: memref<16x16xf32, #tpu.memory_space<vmem>>, %arg14: memref<16x16xf32, #tpu.memory_space<vmem>>, %arg15: memref<8x32xf32, #tpu.memory_space<vmem>>, %arg16: memref<4x!tpu.dma_semaphore, #tpu.memory_space<semaphore_mem>>) attributes {dimension_semantics = [#tpu.dimension_semantics<parallel>], iteration_bounds = array<i64: 2>, scalar_prefetch = 0 : i64, scratch_operands = 4 : i64, tpu.core_type = #tpu.core_type<tc>, window_params = [{transform_indices = @transform_0, window_bounds = array<i64: 1>}, {transform_indices = @transform_1, window_bounds = array<i64: 1, 8, 32>}, {pipeline_mode = #tpu.pipeline_mode<synchronous>, transform_indices = @transform_2, window_bounds = array<i64: 32, 288>}, {pipeline_mode = #tpu.pipeline_mode<synchronous>, transform_indices = @transform_3, window_bounds = array<i64: 32, 32>}, {pipeline_mode = #tpu.pipeline_mode<synchronous>, transform_indices = @transform_4, window_bounds = array<i64: 8, 128>}, {pipeline_mode = #tpu.pipeline_mode<synchronous>, transform_indices = @transform_5, window_bounds = array<i64: 8, 128>}, {pipeline_mode = #tpu.pipeline_mode<synchronous>, transform_indices = @transform_6, window_bounds = array<i64: 8, 128>}, {}, {}, {transform_indices = @transform_9, window_bounds = array<i64: 1, 8, 32>}, {}, {}]} {
    %c0 = arith.constant 0 : index
    %0 = memref.load %arg1[%c0] : memref<1xi32, #tpu.memory_space<smem>>
    %c8_i32 = arith.constant 8 : i32
    %1 = arith.addi %0, %c8_i32 : i32
    %c0_i32 = arith.constant 0 : i32
    %c0_i32_0 = arith.constant 0 : i32
    %c0_i32_1 = arith.constant 0 : i32
    %2 = tpu.memref_slice %arg8[%arg0, %c0_i32_0, %c0_i32_1] : memref<4x16x16xf32, #tpu.memory_space<any>> -> memref<1x16x16xf32, #tpu.memory_space<any>>
    %3 = tpu.memref_squeeze %2 : memref<1x16x16xf32, #tpu.memory_space<any>> -> memref<16x16xf32, #tpu.memory_space<any>>
    %4 = tpu.memref_slice %arg16[%c0_i32] : memref<4x!tpu.dma_semaphore, #tpu.memory_space<semaphore_mem>> -> memref<1x!tpu.dma_semaphore, #tpu.memory_space<semaphore_mem>>
    %5 = tpu.memref_squeeze %4 : memref<1x!tpu.dma_semaphore, #tpu.memory_space<semaphore_mem>> -> memref<!tpu.dma_semaphore, #tpu.memory_space<semaphore_mem>>
    tpu.enqueue_dma source(%3 : memref<16x16xf32, #tpu.memory_space<any>>) target(%arg13 : memref<16x16xf32, #tpu.memory_space<vmem>>) target_semaphore(%5 : memref<!tpu.dma_semaphore, #tpu.memory_space<semaphore_mem>>)
    %c1_i32 = arith.constant 1 : i32
    %c0_i32_2 = arith.constant 0 : i32
    %c0_i32_3 = arith.constant 0 : i32
    %6 = tpu.memref_slice %arg9[%arg0, %c0_i32_2, %c0_i32_3] : memref<4x16x16xf32, #tpu.memory_space<any>> -> memref<1x16x16xf32, #tpu.memory_space<any>>
    %7 = tpu.memref_squeeze %6 : memref<1x16x16xf32, #tpu.memory_space<any>> -> memref<16x16xf32, #tpu.memory_space<any>>
    %8 = tpu.memref_slice %arg16[%c1_i32] : memref<4x!tpu.dma_semaphore, #tpu.memory_space<semaphore_mem>> -> memref<1x!tpu.dma_semaphore, #tpu.memory_space<semaphore_mem>>
    %9 = tpu.memref_squeeze %8 : memref<1x!tpu.dma_semaphore, #tpu.memory_space<semaphore_mem>> -> memref<!tpu.dma_semaphore, #tpu.memory_space<semaphore_mem>>
    tpu.enqueue_dma source(%7 : memref<16x16xf32, #tpu.memory_space<any>>) target(%arg14 : memref<16x16xf32, #tpu.memory_space<vmem>>) target_semaphore(%9 : memref<!tpu.dma_semaphore, #tpu.memory_space<semaphore_mem>>)
    %c0_4 = arith.constant 0 : index
    %c0_5 = arith.constant 0 : index
    %c0_6 = arith.constant 0 : index
    %10 = vector.load %arg2[%c0_4, %c0_5, %c0_6] : memref<1x8x32xbf16, #tpu.memory_space<vmem>>, vector<1x8x32xbf16>
    %11 = vector.shape_cast %10 : vector<1x8x32xbf16> to vector<8x32xbf16>
    %c0_7 = arith.constant 0 : index
    %c0_8 = arith.constant 0 : index
    %12 = vector.load %arg3[%c0_7, %c0_8] : memref<32x288xbf16, #tpu.memory_space<vmem>>, vector<32x288xbf16>
    %cst = arith.constant dense<0.000000e+00> : vector<8x288xf32>
    %13 = tpu.matmul %11, %12, %cst {dimension_numbers = #tpu.dot_dimension_numbers<[1], [0], [0], [1], [0, 0, 1, 1], [], []>} : vector<8x32xbf16>, vector<32x288xbf16>, vector<8x288xf32> -> vector<8x288xf32>
    %14 = vector.extract_strided_slice %13 {offsets = [0, 0], sizes = [8, 128], strides = [1, 1]} : vector<8x288xf32> to vector<8x128xf32>
    %15 = vector.extract_strided_slice %13 {offsets = [0, 128], sizes = [8, 128], strides = [1, 1]} : vector<8x288xf32> to vector<8x128xf32>
    %16 = vector.extract_strided_slice %13 {offsets = [0, 256], sizes = [8, 32], strides = [1, 1]} : vector<8x288xf32> to vector<8x32xf32>
    %c127_i32 = arith.constant 127 : i32
    %17 = tpu.dynamic_rotate %14 by %c127_i32 dim 1 : vector<8x128xf32>, i32 -> vector<8x128xf32>
    %c1_i32_9 = arith.constant 1 : i32
    %18 = tpu.dynamic_rotate %14 by %c1_i32_9 dim 1 : vector<8x128xf32>, i32 -> vector<8x128xf32>
    %c0_10 = arith.constant 0 : index
    %c0_11 = arith.constant 0 : index
    %19 = vector.load %arg5[%c0_10, %c0_11] : memref<8x128xf32, #tpu.memory_space<vmem>>, vector<8x128xf32>
    %20 = arith.mulf %14, %19 : vector<8x128xf32>
    %c0_12 = arith.constant 0 : index
    %c0_13 = arith.constant 0 : index
    %21 = vector.load %arg6[%c0_12, %c0_13] : memref<8x128xf32, #tpu.memory_space<vmem>>, vector<8x128xf32>
    %22 = arith.mulf %17, %21 : vector<8x128xf32>
    %23 = arith.addf %20, %22 : vector<8x128xf32>
    %c0_14 = arith.constant 0 : index
    %c0_15 = arith.constant 0 : index
    %24 = vector.load %arg7[%c0_14, %c0_15] : memref<8x128xf32, #tpu.memory_space<vmem>>, vector<8x128xf32>
    %25 = arith.mulf %18, %24 : vector<8x128xf32>
    %26 = arith.addf %23, %25 : vector<8x128xf32>
    %27 = vector.extract_strided_slice %26 {offsets = [0, 0], sizes = [8, 16], strides = [1, 1]} : vector<8x128xf32> to vector<8x16xf32>
    %c127_i32_16 = arith.constant 127 : i32
    %28 = tpu.dynamic_rotate %15 by %c127_i32_16 dim 1 : vector<8x128xf32>, i32 -> vector<8x128xf32>
    %c1_i32_17 = arith.constant 1 : i32
    %29 = tpu.dynamic_rotate %15 by %c1_i32_17 dim 1 : vector<8x128xf32>, i32 -> vector<8x128xf32>
    %c0_18 = arith.constant 0 : index
    %c0_19 = arith.constant 0 : index
    %30 = vector.load %arg5[%c0_18, %c0_19] : memref<8x128xf32, #tpu.memory_space<vmem>>, vector<8x128xf32>
    %31 = arith.mulf %15, %30 : vector<8x128xf32>
    %c0_20 = arith.constant 0 : index
    %c0_21 = arith.constant 0 : index
    %32 = vector.load %arg6[%c0_20, %c0_21] : memref<8x128xf32, #tpu.memory_space<vmem>>, vector<8x128xf32>
    %33 = arith.mulf %28, %32 : vector<8x128xf32>
    %34 = arith.addf %31, %33 : vector<8x128xf32>
    %c0_22 = arith.constant 0 : index
    %c0_23 = arith.constant 0 : index
    %35 = vector.load %arg7[%c0_22, %c0_23] : memref<8x128xf32, #tpu.memory_space<vmem>>, vector<8x128xf32>
    %36 = arith.mulf %29, %35 : vector<8x128xf32>
    %37 = arith.addf %34, %36 : vector<8x128xf32>
    %38 = vector.extract_strided_slice %37 {offsets = [0, 0], sizes = [8, 16], strides = [1, 1]} : vector<8x128xf32> to vector<8x16xf32>
    %c0_i32_24 = arith.constant 0 : i32
    %c0_i32_25 = arith.constant 0 : i32
    %c0_i32_26 = arith.constant 0 : i32
    %39 = tpu.memref_slice %arg8[%arg0, %c0_i32_25, %c0_i32_26] : memref<4x16x16xf32, #tpu.memory_space<any>> -> memref<1x16x16xf32, #tpu.memory_space<any>>
    %40 = tpu.memref_squeeze %39 : memref<1x16x16xf32, #tpu.memory_space<any>> -> memref<16x16xf32, #tpu.memory_space<any>>
    %41 = tpu.memref_slice %arg16[%c0_i32_24] : memref<4x!tpu.dma_semaphore, #tpu.memory_space<semaphore_mem>> -> memref<1x!tpu.dma_semaphore, #tpu.memory_space<semaphore_mem>>
    %42 = tpu.memref_squeeze %41 : memref<1x!tpu.dma_semaphore, #tpu.memory_space<semaphore_mem>> -> memref<!tpu.dma_semaphore, #tpu.memory_space<semaphore_mem>>
    tpu.wait_dma2 semaphore(%42 : memref<!tpu.dma_semaphore, #tpu.memory_space<semaphore_mem>>) src(%40 : memref<16x16xf32, #tpu.memory_space<any>>) dst(%arg13 : memref<16x16xf32, #tpu.memory_space<vmem>>)
    %c1_i32_27 = arith.constant 1 : i32
    %c0_i32_28 = arith.constant 0 : i32
    %c0_i32_29 = arith.constant 0 : i32
    %43 = tpu.memref_slice %arg9[%arg0, %c0_i32_28, %c0_i32_29] : memref<4x16x16xf32, #tpu.memory_space<any>> -> memref<1x16x16xf32, #tpu.memory_space<any>>
    %44 = tpu.memref_squeeze %43 : memref<1x16x16xf32, #tpu.memory_space<any>> -> memref<16x16xf32, #tpu.memory_space<any>>
    %45 = tpu.memref_slice %arg16[%c1_i32_27] : memref<4x!tpu.dma_semaphore, #tpu.memory_space<semaphore_mem>> -> memref<1x!tpu.dma_semaphore, #tpu.memory_space<semaphore_mem>>
    %46 = tpu.memref_squeeze %45 : memref<1x!tpu.dma_semaphore, #tpu.memory_space<semaphore_mem>> -> memref<!tpu.dma_semaphore, #tpu.memory_space<semaphore_mem>>
    tpu.wait_dma2 semaphore(%46 : memref<!tpu.dma_semaphore, #tpu.memory_space<semaphore_mem>>) src(%44 : memref<16x16xf32, #tpu.memory_space<any>>) dst(%arg14 : memref<16x16xf32, #tpu.memory_space<vmem>>)
    %47 = arith.index_cast %0 : i32 to index
    %c0_30 = arith.constant 0 : index
    %48 = vector.load %arg13[%47, %c0_30] : memref<16x16xf32, #tpu.memory_space<vmem>>, vector<8x16xf32>
    tpu.vector_store %arg13[%47, %c0_30], %27 {strides = array<i32>} : memref<16x16xf32, #tpu.memory_space<vmem>>, vector<8x16xf32>,
    %49 = arith.index_cast %0 : i32 to index
    %c0_31 = arith.constant 0 : index
    %50 = vector.load %arg14[%49, %c0_31] : memref<16x16xf32, #tpu.memory_space<vmem>>, vector<8x16xf32>
    tpu.vector_store %arg14[%49, %c0_31], %38 {strides = array<i32>} : memref<16x16xf32, #tpu.memory_space<vmem>>, vector<8x16xf32>,
    %c2_i32 = arith.constant 2 : i32
    %c0_i32_32 = arith.constant 0 : i32
    %51 = tpu.memref_slice %arg13[%0, %c0_i32_32] : memref<16x16xf32, #tpu.memory_space<vmem>> -> memref<8x16xf32, #tpu.memory_space<vmem>>
    %c0_i32_33 = arith.constant 0 : i32
    %52 = tpu.memref_slice %arg11[%arg0, %0, %c0_i32_33] : memref<4x16x16xf32, #tpu.memory_space<any>> -> memref<1x8x16xf32, #tpu.memory_space<any>>
    %53 = tpu.memref_squeeze %52 : memref<1x8x16xf32, #tpu.memory_space<any>> -> memref<8x16xf32, #tpu.memory_space<any>>
    %54 = tpu.memref_slice %arg16[%c2_i32] : memref<4x!tpu.dma_semaphore, #tpu.memory_space<semaphore_mem>> -> memref<1x!tpu.dma_semaphore, #tpu.memory_space<semaphore_mem>>
    %55 = tpu.memref_squeeze %54 : memref<1x!tpu.dma_semaphore, #tpu.memory_space<semaphore_mem>> -> memref<!tpu.dma_semaphore, #tpu.memory_space<semaphore_mem>>
    tpu.enqueue_dma source(%51 : memref<8x16xf32, #tpu.memory_space<vmem>>) target(%53 : memref<8x16xf32, #tpu.memory_space<any>>) target_semaphore(%55 : memref<!tpu.dma_semaphore, #tpu.memory_space<semaphore_mem>>)
    %c3_i32 = arith.constant 3 : i32
    %c0_i32_34 = arith.constant 0 : i32
    %56 = tpu.memref_slice %arg14[%0, %c0_i32_34] : memref<16x16xf32, #tpu.memory_space<vmem>> -> memref<8x16xf32, #tpu.memory_space<vmem>>
    %c0_i32_35 = arith.constant 0 : i32
    %57 = tpu.memref_slice %arg12[%arg0, %0, %c0_i32_35] : memref<4x16x16xf32, #tpu.memory_space<any>> -> memref<1x8x16xf32, #tpu.memory_space<any>>
    %58 = tpu.memref_squeeze %57 : memref<1x8x16xf32, #tpu.memory_space<any>> -> memref<8x16xf32, #tpu.memory_space<any>>
    %59 = tpu.memref_slice %arg16[%c3_i32] : memref<4x!tpu.dma_semaphore, #tpu.memory_space<semaphore_mem>> -> memref<1x!tpu.dma_semaphore, #tpu.memory_space<semaphore_mem>>
    %60 = tpu.memref_squeeze %59 : memref<1x!tpu.dma_semaphore, #tpu.memory_space<semaphore_mem>> -> memref<!tpu.dma_semaphore, #tpu.memory_space<semaphore_mem>>
    tpu.enqueue_dma source(%56 : memref<8x16xf32, #tpu.memory_space<vmem>>) target(%58 : memref<8x16xf32, #tpu.memory_space<any>>) target_semaphore(%60 : memref<!tpu.dma_semaphore, #tpu.memory_space<semaphore_mem>>)
    %c0_36 = arith.constant 0 : index
    %c0_37 = arith.constant 0 : index
    %61 = vector.load %arg13[%c0_36, %c0_37] : memref<16x16xf32, #tpu.memory_space<vmem>>, vector<16x16xf32>
    %62 = arith.truncf %61 : vector<16x16xf32> to vector<16x16xbf16>
    %c0_38 = arith.constant 0 : index
    %c0_39 = arith.constant 0 : index
    %63 = vector.load %arg14[%c0_38, %c0_39] : memref<16x16xf32, #tpu.memory_space<vmem>>, vector<16x16xf32>
    %64 = arith.truncf %63 : vector<16x16xf32> to vector<16x16xbf16>
    %65 = arith.truncf %16 : vector<8x32xf32> to vector<8x32xbf16>
    %66 = tpu.iota {dimensions = array<i32: 1>} : vector<8x16xi32>
    %67 = vector.broadcast %1 : i32 to vector<8x16xi32>
    %68 = arith.cmpi slt, %66, %67 : vector<8x16xi32>
    %cst_40 = arith.constant 0.000000e+00 : f32
    %cst_41 = arith.constant -1.000000e+30 : f32
    %69 = vector.broadcast %cst_40 : f32 to vector<8x16xf32>
    %70 = vector.broadcast %cst_41 : f32 to vector<8x16xf32>
    %71 = arith.select %68, %69, %70 : vector<8x16xi1>, vector<8x16xf32>
    %72 = vector.extract_strided_slice %62 {offsets = [0, 0], sizes = [16, 8], strides = [1, 1]} : vector<16x16xbf16> to vector<16x8xbf16>
    %73 = vector.extract_strided_slice %64 {offsets = [0, 0], sizes = [16, 8], strides = [1, 1]} : vector<16x16xbf16> to vector<16x8xbf16>
    %74 = vector.extract_strided_slice %65 {offsets = [0, 0], sizes = [8, 8], strides = [1, 1]} : vector<8x32xbf16> to vector<8x8xbf16>
    %cst_42 = arith.constant dense<0.000000e+00> : vector<8x16xf32>
    %75 = tpu.matmul %74, %72, %cst_42 {dimension_numbers = #tpu.dot_dimension_numbers<[1], [1], [0], [0], [0, 0, 1, 0], [], []>} : vector<8x8xbf16>, vector<16x8xbf16>, vector<8x16xf32> -> vector<8x16xf32>
    %76 = arith.addf %75, %71 : vector<8x16xf32>
    %cst_43 = arith.constant dense<0xFF800000> : vector<8xf32>
    %77 = vector.multi_reduction <maximumf>, %76, %cst_43 [1] : vector<8x16xf32> to vector<8xf32>
    %78 = vector.shape_cast %77 : vector<8xf32> to vector<8x1xf32>
    %79 = vector.broadcast %78 : vector<8x1xf32> to vector<8x16xf32>
    %80 = arith.subf %76, %79 : vector<8x16xf32>
    %81 = math.exp %80 : vector<8x16xf32>
    %cst_44 = arith.constant dense<0.000000e+00> : vector<8xf32>
    %82 = vector.multi_reduction <add>, %81, %cst_44 [1] : vector<8x16xf32> to vector<8xf32>
    %83 = vector.shape_cast %82 : vector<8xf32> to vector<8x1xf32>
    %84 = tpu.reciprocal %83 {approx = true} : vector<8x1xf32> -> vector<8x1xf32>
    %85 = vector.broadcast %84 : vector<8x1xf32> to vector<8x16xf32>
    %86 = arith.mulf %81, %85 : vector<8x16xf32>
    %87 = arith.truncf %86 : vector<8x16xf32> to vector<8x16xbf16>
    %cst_45 = arith.constant dense<0.000000e+00> : vector<8x8xf32>
    %88 = tpu.matmul %87, %73, %cst_45 {dimension_numbers = #tpu.dot_dimension_numbers<[1], [0], [0], [1], [0, 0, 1, 1], [], []>} : vector<8x16xbf16>, vector<16x8xbf16>, vector<8x8xf32> -> vector<8x8xf32>
    %c0_46 = arith.constant 0 : index
    %c0_47 = arith.constant 0 : index
    %89 = vector.load %arg15[%c0_46, %c0_47] : memref<8x32xf32, #tpu.memory_space<vmem>>, vector<8x8xf32>
    tpu.vector_store %arg15[%c0_46, %c0_47], %88 {strides = array<i32>} : memref<8x32xf32, #tpu.memory_space<vmem>>, vector<8x8xf32>,
    %90 = vector.extract_strided_slice %65 {offsets = [0, 8], sizes = [8, 8], strides = [1, 1]} : vector<8x32xbf16> to vector<8x8xbf16>
    %cst_48 = arith.constant dense<0.000000e+00> : vector<8x16xf32>
    %91 = tpu.matmul %90, %72, %cst_48 {dimension_numbers = #tpu.dot_dimension_numbers<[1], [1], [0], [0], [0, 0, 1, 0], [], []>} : vector<8x8xbf16>, vector<16x8xbf16>, vector<8x16xf32> -> vector<8x16xf32>
    %92 = arith.addf %91, %71 : vector<8x16xf32>
    %cst_49 = arith.constant dense<0xFF800000> : vector<8xf32>
    %93 = vector.multi_reduction <maximumf>, %92, %cst_49 [1] : vector<8x16xf32> to vector<8xf32>
    %94 = vector.shape_cast %93 : vector<8xf32> to vector<8x1xf32>
    %95 = vector.broadcast %94 : vector<8x1xf32> to vector<8x16xf32>
    %96 = arith.subf %92, %95 : vector<8x16xf32>
    %97 = math.exp %96 : vector<8x16xf32>
    %cst_50 = arith.constant dense<0.000000e+00> : vector<8xf32>
    %98 = vector.multi_reduction <add>, %97, %cst_50 [1] : vector<8x16xf32> to vector<8xf32>
    %99 = vector.shape_cast %98 : vector<8xf32> to vector<8x1xf32>
    %100 = tpu.reciprocal %99 {approx = true} : vector<8x1xf32> -> vector<8x1xf32>
    %101 = vector.broadcast %100 : vector<8x1xf32> to vector<8x16xf32>
    %102 = arith.mulf %97, %101 : vector<8x16xf32>
    %103 = arith.truncf %102 : vector<8x16xf32> to vector<8x16xbf16>
    %cst_51 = arith.constant dense<0.000000e+00> : vector<8x8xf32>
    %104 = tpu.matmul %103, %73, %cst_51 {dimension_numbers = #tpu.dot_dimension_numbers<[1], [0], [0], [1], [0, 0, 1, 1], [], []>} : vector<8x16xbf16>, vector<16x8xbf16>, vector<8x8xf32> -> vector<8x8xf32>
    %c0_52 = arith.constant 0 : index
    %c8 = arith.constant 8 : index
    %105 = vector.load %arg15[%c0_52, %c8] : memref<8x32xf32, #tpu.memory_space<vmem>>, vector<8x8xf32>
    tpu.vector_store %arg15[%c0_52, %c8], %104 {strides = array<i32>} : memref<8x32xf32, #tpu.memory_space<vmem>>, vector<8x8xf32>,
    %106 = vector.extract_strided_slice %62 {offsets = [0, 8], sizes = [16, 8], strides = [1, 1]} : vector<16x16xbf16> to vector<16x8xbf16>
    %107 = vector.extract_strided_slice %64 {offsets = [0, 8], sizes = [16, 8], strides = [1, 1]} : vector<16x16xbf16> to vector<16x8xbf16>
    %108 = vector.extract_strided_slice %65 {offsets = [0, 16], sizes = [8, 8], strides = [1, 1]} : vector<8x32xbf16> to vector<8x8xbf16>
    %cst_53 = arith.constant dense<0.000000e+00> : vector<8x16xf32>
    %109 = tpu.matmul %108, %106, %cst_53 {dimension_numbers = #tpu.dot_dimension_numbers<[1], [1], [0], [0], [0, 0, 1, 0], [], []>} : vector<8x8xbf16>, vector<16x8xbf16>, vector<8x16xf32> -> vector<8x16xf32>
    %110 = arith.addf %109, %71 : vector<8x16xf32>
    %cst_54 = arith.constant dense<0xFF800000> : vector<8xf32>
    %111 = vector.multi_reduction <maximumf>, %110, %cst_54 [1] : vector<8x16xf32> to vector<8xf32>
    %112 = vector.shape_cast %111 : vector<8xf32> to vector<8x1xf32>
    %113 = vector.broadcast %112 : vector<8x1xf32> to vector<8x16xf32>
    %114 = arith.subf %110, %113 : vector<8x16xf32>
    %115 = math.exp %114 : vector<8x16xf32>
    %cst_55 = arith.constant dense<0.000000e+00> : vector<8xf32>
    %116 = vector.multi_reduction <add>, %115, %cst_55 [1] : vector<8x16xf32> to vector<8xf32>
    %117 = vector.shape_cast %116 : vector<8xf32> to vector<8x1xf32>
    %118 = tpu.reciprocal %117 {approx = true} : vector<8x1xf32> -> vector<8x1xf32>
    %119 = vector.broadcast %118 : vector<8x1xf32> to vector<8x16xf32>
    %120 = arith.mulf %115, %119 : vector<8x16xf32>
    %121 = arith.truncf %120 : vector<8x16xf32> to vector<8x16xbf16>
    %cst_56 = arith.constant dense<0.000000e+00> : vector<8x8xf32>
    %122 = tpu.matmul %121, %107, %cst_56 {dimension_numbers = #tpu.dot_dimension_numbers<[1], [0], [0], [1], [0, 0, 1, 1], [], []>} : vector<8x16xbf16>, vector<16x8xbf16>, vector<8x8xf32> -> vector<8x8xf32>
    %c0_57 = arith.constant 0 : index
    %c16 = arith.constant 16 : index
    %123 = vector.load %arg15[%c0_57, %c16] : memref<8x32xf32, #tpu.memory_space<vmem>>, vector<8x8xf32>
    tpu.vector_store %arg15[%c0_57, %c16], %122 {strides = array<i32>} : memref<8x32xf32, #tpu.memory_space<vmem>>, vector<8x8xf32>,
    %124 = vector.extract_strided_slice %65 {offsets = [0, 24], sizes = [8, 8], strides = [1, 1]} : vector<8x32xbf16> to vector<8x8xbf16>
    %cst_58 = arith.constant dense<0.000000e+00> : vector<8x16xf32>
    %125 = tpu.matmul %124, %106, %cst_58 {dimension_numbers = #tpu.dot_dimension_numbers<[1], [1], [0], [0], [0, 0, 1, 0], [], []>} : vector<8x8xbf16>, vector<16x8xbf16>, vector<8x16xf32> -> vector<8x16xf32>
    %126 = arith.addf %125, %71 : vector<8x16xf32>
    %cst_59 = arith.constant dense<0xFF800000> : vector<8xf32>
    %127 = vector.multi_reduction <maximumf>, %126, %cst_59 [1] : vector<8x16xf32> to vector<8xf32>
    %128 = vector.shape_cast %127 : vector<8xf32> to vector<8x1xf32>
    %129 = vector.broadcast %128 : vector<8x1xf32> to vector<8x16xf32>
    %130 = arith.subf %126, %129 : vector<8x16xf32>
    %131 = math.exp %130 : vector<8x16xf32>
    %cst_60 = arith.constant dense<0.000000e+00> : vector<8xf32>
    %132 = vector.multi_reduction <add>, %131, %cst_60 [1] : vector<8x16xf32> to vector<8xf32>
    %133 = vector.shape_cast %132 : vector<8xf32> to vector<8x1xf32>
    %134 = tpu.reciprocal %133 {approx = true} : vector<8x1xf32> -> vector<8x1xf32>
    %135 = vector.broadcast %134 : vector<8x1xf32> to vector<8x16xf32>
    %136 = arith.mulf %131, %135 : vector<8x16xf32>
    %137 = arith.truncf %136 : vector<8x16xf32> to vector<8x16xbf16>
    %cst_61 = arith.constant dense<0.000000e+00> : vector<8x8xf32>
    %138 = tpu.matmul %137, %107, %cst_61 {dimension_numbers = #tpu.dot_dimension_numbers<[1], [0], [0], [1], [0, 0, 1, 1], [], []>} : vector<8x16xbf16>, vector<16x8xbf16>, vector<8x8xf32> -> vector<8x8xf32>
    %c0_62 = arith.constant 0 : index
    %c24 = arith.constant 24 : index
    %139 = vector.load %arg15[%c0_62, %c24] : memref<8x32xf32, #tpu.memory_space<vmem>>, vector<8x8xf32>
    tpu.vector_store %arg15[%c0_62, %c24], %138 {strides = array<i32>} : memref<8x32xf32, #tpu.memory_space<vmem>>, vector<8x8xf32>,
    %c0_63 = arith.constant 0 : index
    %c0_64 = arith.constant 0 : index
    %140 = vector.load %arg15[%c0_63, %c0_64] : memref<8x32xf32, #tpu.memory_space<vmem>>, vector<8x32xf32>
    %141 = arith.truncf %140 : vector<8x32xf32> to vector<8x32xbf16>
    %c0_65 = arith.constant 0 : index
    %c0_66 = arith.constant 0 : index
    %142 = vector.load %arg4[%c0_65, %c0_66] : memref<32x32xbf16, #tpu.memory_space<vmem>>, vector<32x32xbf16>
    %cst_67 = arith.constant dense<0.000000e+00> : vector<8x32xf32>
    %143 = tpu.matmul %141, %142, %cst_67 {dimension_numbers = #tpu.dot_dimension_numbers<[1], [0], [0], [1], [0, 0, 1, 1], [], []>} : vector<8x32xbf16>, vector<32x32xbf16>, vector<8x32xf32> -> vector<8x32xf32>
    %c0_68 = arith.constant 0 : index
    %c0_69 = arith.constant 0 : index
    %c0_70 = arith.constant 0 : index
    %144 = vector.load %arg10[%c0_68, %c0_69, %c0_70] : memref<1x8x32xf32, #tpu.memory_space<vmem>>, vector<1x8x32xf32>
    %145 = vector.shape_cast %144 : vector<1x8x32xf32> to vector<8x32xf32>
    %146 = vector.shape_cast %143 : vector<8x32xf32> to vector<1x8x32xf32>
    tpu.vector_store %arg10[%c0_68, %c0_69, %c0_70], %146 {strides = array<i32>} : memref<1x8x32xf32, #tpu.memory_space<vmem>>, vector<1x8x32xf32>,
    %c2_i32_71 = arith.constant 2 : i32
    %c0_i32_72 = arith.constant 0 : i32
    %147 = tpu.memref_slice %arg13[%0, %c0_i32_72] : memref<16x16xf32, #tpu.memory_space<vmem>> -> memref<8x16xf32, #tpu.memory_space<vmem>>
    %c0_i32_73 = arith.constant 0 : i32
    %148 = tpu.memref_slice %arg11[%arg0, %0, %c0_i32_73] : memref<4x16x16xf32, #tpu.memory_space<any>> -> memref<1x8x16xf32, #tpu.memory_space<any>>
    %149 = tpu.memref_squeeze %148 : memref<1x8x16xf32, #tpu.memory_space<any>> -> memref<8x16xf32, #tpu.memory_space<any>>
    %150 = tpu.memref_slice %arg16[%c2_i32_71] : memref<4x!tpu.dma_semaphore, #tpu.memory_space<semaphore_mem>> -> memref<1x!tpu.dma_semaphore, #tpu.memory_space<semaphore_mem>>
    %151 = tpu.memref_squeeze %150 : memref<1x!tpu.dma_semaphore, #tpu.memory_space<semaphore_mem>> -> memref<!tpu.dma_semaphore, #tpu.memory_space<semaphore_mem>>
    tpu.wait_dma2 semaphore(%151 : memref<!tpu.dma_semaphore, #tpu.memory_space<semaphore_mem>>) src(%147 : memref<8x16xf32, #tpu.memory_space<vmem>>) dst(%149 : memref<8x16xf32, #tpu.memory_space<any>>)
    %c3_i32_74 = arith.constant 3 : i32
    %c0_i32_75 = arith.constant 0 : i32
    %152 = tpu.memref_slice %arg14[%0, %c0_i32_75] : memref<16x16xf32, #tpu.memory_space<vmem>> -> memref<8x16xf32, #tpu.memory_space<vmem>>
    %c0_i32_76 = arith.constant 0 : i32
    %153 = tpu.memref_slice %arg12[%arg0, %0, %c0_i32_76] : memref<4x16x16xf32, #tpu.memory_space<any>> -> memref<1x8x16xf32, #tpu.memory_space<any>>
    %154 = tpu.memref_squeeze %153 : memref<1x8x16xf32, #tpu.memory_space<any>> -> memref<8x16xf32, #tpu.memory_space<any>>
    %155 = tpu.memref_slice %arg16[%c3_i32_74] : memref<4x!tpu.dma_semaphore, #tpu.memory_space<semaphore_mem>> -> memref<1x!tpu.dma_semaphore, #tpu.memory_space<semaphore_mem>>
    %156 = tpu.memref_squeeze %155 : memref<1x!tpu.dma_semaphore, #tpu.memory_space<semaphore_mem>> -> memref<!tpu.dma_semaphore, #tpu.memory_space<semaphore_mem>>
    tpu.wait_dma2 semaphore(%156 : memref<!tpu.dma_semaphore, #tpu.memory_space<semaphore_mem>>) src(%152 : memref<8x16xf32, #tpu.memory_space<vmem>>) dst(%154 : memref<8x16xf32, #tpu.memory_space<any>>)
    return
  }
  func.func @transform_0(%arg0: i32) -> i32 {
    %c0_i32 = arith.constant 0 : i32
    %c0_i32_0 = arith.constant 0 : i32
    return %c0_i32 : i32
  }
  func.func @transform_1(%arg0: i32) -> (i32, i32, i32) {
    %c0_i32 = arith.constant 0 : i32
    %c0_i32_0 = arith.constant 0 : i32
    %c0_i32_1 = arith.constant 0 : i32
    return %arg0, %c0_i32, %c0_i32_0 : i32, i32, i32
  }
  func.func @transform_2(%arg0: i32) -> (i32, i32) {
    %c0_i32 = arith.constant 0 : i32
    %c0_i32_0 = arith.constant 0 : i32
    %c0_i32_1 = arith.constant 0 : i32
    return %c0_i32, %c0_i32_0 : i32, i32
  }
  func.func @transform_3(%arg0: i32) -> (i32, i32) {
    %c0_i32 = arith.constant 0 : i32
    %c0_i32_0 = arith.constant 0 : i32
    %c0_i32_1 = arith.constant 0 : i32
    return %c0_i32, %c0_i32_0 : i32, i32
  }
  func.func @transform_4(%arg0: i32) -> (i32, i32) {
    %c0_i32 = arith.constant 0 : i32
    %c0_i32_0 = arith.constant 0 : i32
    %c0_i32_1 = arith.constant 0 : i32
    return %c0_i32, %c0_i32_0 : i32, i32
  }
  func.func @transform_5(%arg0: i32) -> (i32, i32) {
    %c0_i32 = arith.constant 0 : i32
    %c0_i32_0 = arith.constant 0 : i32
    %c0_i32_1 = arith.constant 0 : i32
    return %c0_i32, %c0_i32_0 : i32, i32
  }
  func.func @transform_6(%arg0: i32) -> (i32, i32) {
    %c0_i32 = arith.constant 0 : i32
    %c0_i32_0 = arith.constant 0 : i32
    %c0_i32_1 = arith.constant 0 : i32
    return %c0_i32, %c0_i32_0 : i32, i32
  }
  func.func @transform_9(%arg0: i32) -> (i32, i32, i32) {
    %c0_i32 = arith.constant 0 : i32
    %c0_i32_0 = arith.constant 0 : i32
    %c0_i32_1 = arith.constant 0 : i32
    return %arg0, %c0_i32, %c0_i32_0 : i32, i32, i32
  }
}

</mosaic_0001>

<bundles_post_ra>
// kernel: tile.17
= control target key start
LH: loop header
LB: loop body
LE: loop exit
PB: predicated region body
PF: predicated region fallthrough
CT: control target
= control target key end

     0   :  { %vm43_vm0 = vcmask 1047556   ;;  %vm45_vm1 = vcmask 64512   ;;  %vm55_vm2 = vcmask 130112   ;;  %s112_s0 = inlined_call_operand.vmem [shape: f32[8,2,8], index: 0, kind: input, shape index: {}]   ;;  %s113_s1 = inlined_call_operand.vmem [shape: f32[8,16], index: 1, kind: output, shape index: {}]  }
   0x1   :  { %v63_v0 = vld [vmem:[%s112_s0 + $0xe] sm:$0x3]  ;;  %v64_v1 = vld [vmem:[%s112_s0 + $0xc] sm:$0x3]  ;;  %v65_v2 = vld [vmem:[%s112_s0 + $0xa] sm:$0x3] }
   0x2   :  { %9 = vst [vmem:[#allocation0 + $0x38] sm:$0x3] %v63_v0  ;;  %14 = vst [vmem:[#allocation0 + $0x30] sm:$0x3] %v64_v1  ;;  %v66_v3 = vld [vmem:[%s112_s0 + $0x8] sm:$0x3] }
   0x3   :  { %19 = vst [vmem:[#allocation0 + $0x28] sm:$0x3] %v65_v2  ;;  %v67_v4 = vld [vmem:[%s112_s0 + $0x6] sm:$0x3]  ;;  %v68_v5 = vld [vmem:[%s112_s0 + $0x4] sm:$0x3] }
   0x4   :  { %24 = vst [vmem:[#allocation0 + $0x20] sm:$0x3] %v66_v3  ;;  %29 = vst [vmem:[#allocation0 + $0x18] sm:$0x3] %v67_v4  ;;  %v69_v6 = vld [vmem:[%s112_s0 + $0x2] sm:$0x3] }
   0x5   :  { %34 = vst [vmem:[#allocation0 + $0x10] sm:$0x3] %v68_v5  ;;  %v39_v7 = vld [vmem:[%s112_s0] sm:$0x3]  ;;  %38 = vst [vmem:[#allocation0 + $0x8] sm:$0x3] %v69_v6 }
   0x6   :  { %40 = vst [vmem:[#allocation0] sm:$0x3] %v39_v7  ;;  %s71_s0 = smov 8  }
   0xb   :  { %v42_v8 = vld [vmem:[#allocation0] ss:$8 sm:$0xf0]   ;;  %v50_v9 = vld [vmem:[#allocation0 + $0x1] ss:$8 sm:$0xf0]  }
   0xd   :  { %v41_v10 = vld [vmem:[#allocation0] ss:$8 sm:$0xf]   ;;  %v48_v11 = vld [vmem:[#allocation0 + $0x1] ss:$8 sm:$0xf]  }
   0xe   :  { %v44_v12 = vsel %vm43_vm0, %v42_v8, %v41_v10  ;;  %v52_v13 = vsel %vm43_vm0, %v50_v9, %v48_v11 }
   0xf   :  { %53 = vrot.lane.b32.xlu0 %v52_v13, %s71_s0  ;;  %46 = vst.msk [vmem:[%s113_s1] sm:$0xff] %vm45_vm1, %v44_v12  }
  0x81   :  { %v54_v14 = vpop.permute.xlu0 %53  }
  0x82   :  { %56 = vst.msk [vmem:[%s113_s1] sm:$0xff] %vm55_vm2, %v54_v14  }

// kernel: self_attention_forward.1
= control target key start
LH: loop header
LB: loop body
LE: loop exit
PB: predicated region body
PF: predicated region fallthrough
CT: control target
= control target key end

     0   :  { %s1840_s0 = inlined_call_operand.<no memory space> [shape: s32[1], index: 0, kind: input, shape index: {}]   ;;  %s1841_s1 = inlined_call_operand.vmem [shape: bf16[2,8,32], index: 1, kind: input, shape index: {}]   ;;  %s1842_s2 = inlined_call_operand.vmem [shape: bf16[32,288], index: 2, kind: input, shape index: {}]   ;;  %s1843_s3 = inlined_call_operand.vmem [shape: bf16[32,32], index: 3, kind: input, shape index: {}]   ;;  %s1844_s4 = inlined_call_operand.vmem [shape: f32[8,128], index: 4, kind: input, shape index: {}]   ;;  %s1845_s5 = inlined_call_operand.vmem [shape: f32[8,128], index: 5, kind: input, shape index: {}]   ;;  %s1846_s6 = inlined_call_operand.vmem [shape: f32[8,128], index: 6, kind: input, shape index: {}]   ;;  %s1847_s7 = inlined_call_operand.vmem [shape: f32[4,16,16], index: 7, kind: input, shape index: {}, may-alias: {7,10}]   ;;  %s1848_s8 = inlined_call_operand.vmem [shape: f32[4,16,16], index: 8, kind: input, shape index: {}, may-alias: {8,11}]   ;;  %s1849_s9 = inlined_call_operand.hbm [shape: f32[2,8,32], index: 9, kind: output, shape index: {0}]   ;;  %s1850_s10 = inlined_call_operand.vmem [shape: f32[4,16,16], index: 10, kind: output, shape index: {1}, may-alias: {7,10}]   ;;  %s1851_s11 = inlined_call_operand.vmem [shape: f32[4,16,16], index: 11, kind: output, shape index: {2}, may-alias: {8,11}]  }
   0x1   :  { %17 = sst [smem:[#allocation6]] %s1840_s0 }
   0x2   :  { %18 = vsyncpa [#allocation8], 0 }
   0x3   :  { %20 = vsyncpa [#allocation8 + $0x1], 0  ;;  %s1623_s19 = smov 0   ;;  %s1625_s20 = smov 0  }
   0x4   :  { %s1627_s21 = smov 0   ;;  %s1629_s22 = smov 0  }
   0x5 LB: > { %1858 = sst [smem:[#allocation18_spill]] %s1533_s19  ;;  %s1644_s0 = sadd.s32 4294967295, %s1545_s22   ;;  %s1545_s22 = sphi %s1629_s22, %s1868_s22   ;;  %s1541_s21 = sphi %s1627_s21, %s1870_s21   ;;  %s1537_s20 = sphi %s1625_s20, %s1872_s20   ;;  %s1533_s19 = sphi %s1623_s19, %s1871_s19  }
   0x6   : > { %1859 = sst [smem:[#allocation19_spill]] %s1541_s21  ;;  %s1280_s23 = sadd.s32 4294967294, %s1545_s22  }
   0x7   : > { %s1648_s24 = sadd.s32 1, %s1545_s22   ;;  %s185_s25 = sadd.s32 1, %s1541_s21 }
   0x8   : > { %1860 = sst [smem:[#allocation20_spill]] %s1648_s24  ;;  %s182_s26 = ssub.s32 %s1545_s22, %s1648_s24 }
   0x9   : > { %p195_p0 = scmp.ne.s32.totalorder %s1541_s21, %s1537_s20  ;;  %p183_p1 = scmp.eq.s32.totalorder %s182_s26, 0 }
   0xa   : > { %p196_p2 = scmp.eq.s32.totalorder %s1644_s0, 1  ;;  %p201_p3 = scmp.ne.s32.totalorder %s1537_s20, %s1533_s19 }
   0xb   : > { %p202_p4 = scmp.eq.s32.totalorder %s1280_s23, 1  ;;  %p1283_p7 = scmp.ge.s32.totalorder %s1545_s22, 1 }
   0xc   : > { %s1659_s27 = scalar_select %p183_p1, %s1541_s21, %s185_s25  }
   0xd   : > { %p1661_p5 = por %p196_p2, %p195_p0  ;;  %p1665_p6 = por %p202_p4, %p201_p3 }
   0xe   : > { %1861 = sst [smem:[#allocation21_spill]] %s1659_s27  ;;  %p245_p8 = scmp.lt.s32.totalorder %s1545_s22, 3 }
   0xf   : > { %s1863_s29 = scalar_select %p1665_p6, 1, 0 }
  0x10   : > { %p246_p9 = pnand %p1283_p7, %p245_p8 }
  0x11   : > { %1864 = sst [smem:[#allocation22_spill]] %s1863_s29  ;;  %s1852_s30 = sand.u32 (!%p246_p9), 1, %s1537_s20  }
  0x12   : > { %249 = sbr.rel (%p246_p9) target bundleno = 1562 (0x61a), region = 48  ;;  %p276_p10 = scmp.lt.s32.totalorder (!%p246_p9), %s1644_s0, 1 }
  0x13   : > { %s1675_s12 = sshll.u32 (!%p246_p9), %s1852_s30, 3  ;;  %s1677_s13 = sld [smem:[#allocation6]] (!%p246_p9) }
  0x14   : > { %s1680_s14 = sshll.u32 (!%p246_p9), %s1644_s0, 4  ;;  %s275_s21 = scalar_lea.vmem (!%p246_p9), [#allocation7], %s1675_s12 }
  0x15   : > { %s284_s18 = scalar_lea.vmem (!%p246_p9), %s1847_s7, %s1680_s14 }
  0x17   : > { %s277_s15 = scalar_select %p276_p10, %s1644_s0, 1  ;;  %v318_v0 = vld [vmem:[%s284_s18] sm:$0xff]  ;;  %v320_v1 = vld [vmem:[%s284_s18 + $0x8] sm:$0xff] }
  0x18   : > { %319 = vst [vmem:[#allocation2] sm:$0xff] %v318_v0  ;;  %321 = vst [vmem:[#allocation2 + $0x8] sm:$0xff] %v320_v1 }
  0x19   : > { %s1285_s23 = sshll.u32 %s277_s15, 2  ;;  %s282_s27 = sadd.s32 8, %s1677_s13 }
  0x1a   : > { %s279_s30 = scalar_lea.vmem %s1841_s1, %s1285_s23 }
  0x1b   : > { %329 = vsyncadd [#allocation5], 256  ;;  %s330_s19 = scalar_lea.vmem %s1848_s8, %s1680_s14 }
  0x1c   : > { %v365_v2 = vld [vmem:[%s330_s19] sm:$0xff]  ;;  %v367_v3 = vld [vmem:[%s330_s19 + $0x8] sm:$0xff] }
  0x1d   : > { %366 = vst [vmem:[#allocation3] sm:$0xff] %v365_v2  ;;  %368 = vst [vmem:[#allocation3 + $0x8] sm:$0xff] %v367_v3 }
  0x1e   : > { %376 = vsyncadd [#allocation5 + $0x1], 256  ;;  %v1451_v4 = vld [vmem:[%s1842_s2 + $0x1c] ss:$12 sps:$4 sm:$0xff]   ;;  %v1453_v5 = vld [vmem:[%s1842_s2 + $0x18] ss:$12 sps:$4 sm:$0xff]  }
  0x1f   : > { %v1547_v6 = vmov 0   ;;  %v1454_v7 = vld [vmem:[%s1842_s2 + $0x4] ss:$12 sps:$4 sm:$0xff]   ;;  %v1548_v8 = vmov 0.0   ;;  %434 = vmatprep.subr.bf16.mxu0 %v1451_v4  ;;  %v1456_v9 = vld [vmem:[%s1842_s2] ss:$12 sps:$4 sm:$0xff]  }
  0x20   : > { %454 = vmatprep.mubr.bf16.mxu0 %v1547_v6  ;;  %1336 = vmatprep.subr.bf16.mxu1 %v1548_v8  ;;  %vm1549_vm0 = vmmov 0   ;;  %v1457_v10 = vld [vmem:[%s1842_s2 + $0x20] ss:$12 sps:$4 sm:$0xff]   ;;  %v1458_v11 = vld [vmem:[%s1842_s2 + $0x8] ss:$12 sps:$4 sm:$0xff]   ;;  %vm418_vm1 = vcmask 261120  }
  0x21   : > { %1340 = vmatprep.mubr.msk.bf16.mxu1 %vm1549_vm0, %v1548_v8  ;;  %435 = vmatpush1.bf16.msra.mxu0 %v1453_v5  ;;  %v377_v12 = vld [vmem:[%s279_s30] sm:$0xf]  ;;  %s1550_s17 = smov 1   ;;  %s1551_s18 = smov 127  }
  0x22   : > { %436 = vmatprep.subr.bf16.mxu0 %v1454_v7  ;;  %1337 = vmatpush3.bf16.msra.mxu1 %v1457_v10  ;;  %v507_v21 = vld [vmem:[%s1844_s4] sm:$0xff] }
  0x23   : > { %1338 = vmatprep.subr.bf16.mxu1 %v1548_v8  ;;  %v509_v22 = vld [vmem:[%s1845_s5] sm:$0xff] }
  0x24   : > { %v512_v23 = vld [vmem:[%s1846_s6] sm:$0xff] }
  0x25   : > { %437 = vmatpush1.bf16.msra.mxu0 %v1456_v9 }
  0x26   : > { %1339 = vmatpush3.bf16.msra.mxu1 %v1458_v11 }
  0x28   : > { %1293 = vmatmul.mubr.msk.bf16.vlgmr.msra.gmra.mxu0 %vm418_vm1, %v377_v12 }
  0x29   : > { %1341 = vmatmul.mubr.msk.bf16.vlgmr.msra.gmra.mxu1 %vm418_vm1, %v377_v12 }
  0xe8   : > { %v456_v13 = vpop.f32.mrf.mxu0 }
  0xe9   : > { %505 = vrot.lane.b32.xlu1 %v456_v13, %s1550_s17  ;;  %503 = vrot.lane.b32.xlu0 %v456_v13, %s1551_s18  ;;  %v497_v15 = vpop.f32.mrf.mxu1  ;;  %v508_v26 = vmul.f32 %v507_v21, %v456_v13 }
  0xea   : > { %v458_v14 = vpop.f32.mrf.mxu0 }
  0xeb   : > { %v1342_v17 = vpop.f32.mrf.mxu1  ;;  %v519_v32 = vmul.f32 %v507_v21, %v458_v14 }
  0xec   : > { %v460_v16 = vpop.f32.mrf.mxu0 }
  0xed   : > { %517 = vrot.lane.b32.xlu1 %v458_v14, %s1550_s17  ;;  %515 = vrot.lane.b32.xlu0 %v458_v14, %s1551_s18  ;;  %v500_v19 = vpop.f32.mrf.mxu1 }
  0xee   : > { %v461_v18 = vpop.f32.mrf.mxu0 }
  0xef   : > { %v1343_v20 = vpop.f32.mrf.mxu1 }
 0x15b   : > { %v506_v24 = vpop.permute.xlu1 %505  ;;  %v504_v25 = vpop.permute.xlu0 %503 }
 0x15c   : > { %v510_v27 = vmul.f32 %v509_v22, %v504_v25  ;;  %v513_v28 = vmul.f32 %v512_v23, %v506_v24 }
 0x15e   : > { %v511_v29 = vadd.f32 %v510_v27, %v508_v26 }
 0x15f   : > { %v518_v30 = vpop.permute.xlu1 %517  ;;  %v516_v31 = vpop.permute.xlu0 %515 }
 0x160   : > { %v514_v33 = vadd.f32 %v513_v28, %v511_v29  ;;  %v520_v34 = vmul.f32 %v516_v31, %v509_v22  ;;  %v522_v35 = vmul.f32 %v518_v30, %v512_v23 }
 0x162   : > { %v521_v36 = vadd.f32 %v520_v34, %v519_v32 }
 0x164   : > { %v523_v37 = vadd.f32 %v522_v35, %v521_v36 }
 0x165   : > { %1519 = dma.done.wait [#allocation5], 256 }
 0x166   : > { %1520 = vsyncadd [#allocation5], 4294967040 }
 0x167   : > { %1521 = dma.done.wait [#allocation5 + $0x1], 256 }
 0x168   : > { %1522 = vsyncadd [#allocation5 + $0x1], 4294967040  ;;  %vm530_vm2 = vcmask 130048   ;;  %s529_s26 = scalar_lea.vmem [#allocation2], %s1677_s13  ;;  %s532_s15 = scalar_lea.vmem [#allocation3], %s1677_s13 }
 0x169   : > { %531 = vst.msk [vmem:[%s529_s26] sm:$0xff] %vm530_vm2, %v514_v33  ;;  %533 = vst.msk [vmem:[%s532_s15] sm:$0xff] %vm530_vm2, %v523_v37  ;;  %s534_s16 = sadd.s32 %s1680_s14, %s1677_s13 }
 0x16a   : > { %s535_s30 = scalar_lea.vmem %s1850_s10, %s534_s16 }
 0x170   : > { %v570_v38 = vld [vmem:[%s529_s26] sm:$0xff] }
 0x171   : > { %571 = vst [vmem:[%s535_s30] sm:$0xff] %v570_v38 }
 0x172   : > { %579 = vsyncadd [#allocation5 + $0x2], 128  ;;  %s580_s19 = scalar_lea.vmem %s1851_s11, %s534_s16  ;;  %v615_v39 = vld [vmem:[%s532_s15] sm:$0xff]  ;;  %v631_v40 = vpack.c.bf16 %v497_v15, %v497_v15 }
 0x173   : > { %616 = vst [vmem:[%s580_s19] sm:$0xff] %v615_v39 }
 0x174   : > { %624 = vsyncadd [#allocation5 + $0x3], 128  ;;  %1344 = vmatprep.subr.bf16.mxu0 %v1548_v8  ;;  %v625_v41 = vld [vmem:[#allocation2] sm:$0xff]  ;;  %v626_v42 = vld [vmem:[#allocation2 + $0x8] sm:$0xff]  ;;  %vm637_vm3 = vcmask 64512   ;;  %1346 = vmatprep.mubr.msk.bf16.mxu0 %vm1549_vm0, %v1548_v8  ;;  %s1552_s14 = smov 120   ;;  %v632_v50 = vlaneseq  ;;  %v634_v52 = vstv %s282_s27 }
 0x175   : > { %v627_v43 = vpack.c.bf16 %v626_v42, %v625_v41  ;;  %1350 = vmatprep.subr.bf16.mxu1 %v1548_v8  ;;  %1352 = vmatprep.mubr.msk.bf16.mxu1 %vm1549_vm0, %v1548_v8  ;;  %s1553_s24 = smov 112   ;;  %s1554_s29 = smov 104   ;;  %v1555_v53 = vmov -1e+30   ;;  %v628_v21 = vld [vmem:[#allocation3] sm:$0xff]  ;;  %v629_v22 = vld [vmem:[#allocation3 + $0x8] sm:$0xff] }
 0x176   : > { %741 = vrot.lane.b32.xlu0 %v631_v40, %s1552_s14  ;;  %847 = vrot.lane.b32.xlu1 %v631_v40, %s1553_s24  ;;  %v633_v51 = vand.u32 127, %v632_v50  ;;  %v630_v23 = vpack.c.bf16 %v629_v22, %v628_v21  ;;  %s1556_s27 = smov 8   ;;  %s1557_s17 = smov 16   ;;  %vm845_vm5 = vcmask 130112   ;;  %vm961_vm6 = vcmask 195712  }
 0x177   : > { %v642_v44 = vsel %vm637_vm3, %v627_v43, 0  ;;  %s1558_s18 = smov 24   ;;  %vm1067_vm7 = vcmask 261312  }
 0x178   : > { %1345 = vmatpush3.bf16.xpose.msra.mxu0 %v642_v44  ;;  %vm635_vm4 = vcmp.lt.s32.totalorder %v633_v51, %v634_v52  ;;  %1351 = vmatpush3.bf16.msra.mxu1 %v630_v23 }
 0x179   : > { %1356 = vmatprep.subr.bf16.mxu0 %v1548_v8  ;;  %v636_v54 = vsel %vm635_vm4, 0.0, %v1555_v53  ;;  %1362 = vmatprep.subr.bf16.mxu1 %v1548_v8 }
 0x17a   : > { %850 = vrot.lane.b32.xlu0 %v627_v43, %s1552_s14  ;;  %963 = vrot.lane.b32.xlu1 %v631_v40, %s1554_s29 }
 0x17f   : > { %1347 = vmatmul.mubr.msk.bf16.vlgmr.msra.gmra.mxu0 %vm637_vm3, %v631_v40 }
 0x180   : > { %1357 = vmatpush3.bf16.xpose.msra.mxu0 %v642_v44  ;;  %1358 = vmatprep.mubr.msk.bf16.mxu0 %vm1549_vm0, %v1548_v8 }
 0x181   : > { %1368 = vmatprep.subr.bf16.mxu0 %v1548_v8 }
 0x1e8   : > { %v742_v45 = vpop.permute.xlu0 %741  ;;  %v848_v48 = vpop.permute.xlu1 %847 }
 0x1e9   : > { %1359 = vmatmul.mubr.msk.bf16.vlgmr.msra.gmra.mxu0 %vm637_vm3, %v742_v45 }
 0x1ea   : > { %1370 = vmatprep.mubr.msk.bf16.mxu0 %vm1549_vm0, %v1548_v8 }
 0x1ec   : > { %v851_v46 = vpop.permute.xlu0 %850  ;;  %v964_v49 = vpop.permute.xlu1 %963 }
 0x1ed   : > { %v856_v47 = vsel %vm637_vm3, %v851_v46, 0 }
 0x1ee   : > { %1369 = vmatpush3.bf16.xpose.msra.mxu0 %v856_v47 }
 0x1ef   : > { %1380 = vmatprep.subr.bf16.mxu0 %v1548_v8 }
 0x1f5   : > { %1371 = vmatmul.mubr.msk.bf16.vlgmr.msra.gmra.mxu0 %vm637_vm3, %v848_v48 }
 0x1f6   : > { %1381 = vmatpush3.bf16.xpose.msra.mxu0 %v856_v47  ;;  %1382 = vmatprep.mubr.msk.bf16.mxu0 %vm1549_vm0, %v1548_v8 }
 0x1f7   : > { %1392 = vmatprep.subr.bf16.mxu0 %v1548_v8 }
 0x1fd   : > { %1383 = vmatmul.mubr.msk.bf16.vlgmr.msra.gmra.mxu0 %vm637_vm3, %v964_v49 }
 0x1fe   : > { %1396 = vmatprep.mubr.msk.bf16.mxu0 %vm1549_vm0, %v1548_v8 }
 0x23f   : > { %v678_v55 = vpop.f32.mrf.mxu0 }
 0x240   : > { %v679_v56 = vadd.f32 %v678_v55, %v636_v54 }
 0x241   : > { %v1348_v57 = vpop.f32.mrf.mxu0 }
 0x242   : > { %v684_v58 = vsel %vm530_vm2, %v679_v56, -inf }
 0x243   : > { %685 = vmax.xlane.f32.xlu0 %v684_v58  ;;  %v681_v59 = vpop.f32.mrf.mxu0 }
 0x245   : > { %v1349_v60 = vpop.f32.mrf.mxu0 }
 0x2a9   : > { %v780_v61 = vpop.f32.mrf.mxu0 }
 0x2aa   : > { %v781_v62 = vadd.f32 %v780_v61, %v636_v54 }
 0x2ab   : > { %v1360_v63 = vpop.f32.mrf.mxu0 }
 0x2ac   : > { %v786_v0 = vsel %vm530_vm2, %v781_v62, -inf }
 0x2ad   : > { %787 = vmax.xlane.f32.xlu1 %v786_v0  ;;  %v783_v1 = vpop.f32.mrf.mxu0  ;;  %v1459_v0 = vld [vmem:[%s1843_s3 + $0x8] sm:$0xff]  }
 0x2ae   : > { %1393 = vmatpush3.bf16.msra.mxu0 %v1459_v0  ;;  %v1460_v1 = vld [vmem:[%s1843_s3] sm:$0xff]  }
 0x2af   : > { %v1361_v2 = vpop.f32.mrf.mxu0  ;;  %1394 = vmatprep.subr.bf16.mxu0 %v1548_v8 }
 0x2b2   : > { %1395 = vmatpush3.bf16.msra.mxu0 %v1460_v1 }
 0x2b5   : > { %v892_v3 = vpop.f32.mrf.mxu0 }
 0x2b6   : > { %v893_v4 = vadd.f32 %v892_v3, %v636_v54 }
 0x2b7   : > { %v1372_v5 = vpop.f32.mrf.mxu0 }
 0x2b8   : > { %v898_v6 = vsel %vm530_vm2, %v893_v4, -inf }
 0x2b9   : > { %899 = vmax.xlane.f32.xlu0 %v898_v6  ;;  %v895_v7 = vpop.f32.mrf.mxu0 }
 0x2bb   : > { %v1373_v9 = vpop.f32.mrf.mxu0 }
 0x2bd   : > { %v1002_v10 = vpop.f32.mrf.mxu0 }
 0x2be   : > { %v1003_v11 = vadd.f32 %v1002_v10, %v636_v54 }
 0x2bf   : > { %v1384_v12 = vpop.f32.mrf.mxu0 }
 0x2c0   : > { %v1008_v13 = vsel %vm530_vm2, %v1003_v11, -inf }
 0x2c1   : > { %1009 = vmax.xlane.f32.xlu0 %v1008_v13  ;;  %v1005_v14 = vpop.f32.mrf.mxu0 }
 0x2c3   : > { %v1385_v15 = vpop.f32.mrf.mxu0 }
 0x2cc   : > { %v686_v16 = vpop.xlane.xlu0 %685 }
 0x2cd   : > { %v687_v17 = vsub.f32 %v679_v56, %v686_v16 }
 0x2cf   : > { %v688_v18 = vmul.f32 1.442695, %v687_v17 }
 0x2d1   : > { %1461 = vpow2.f32 %v688_v18 }
 0x2de   : > { %v1462_v19 = vpop.eup %1461 }
 0x2df   : > { %v690_v20 = vsel %vm530_vm2, %v1462_v19, 0.0 }
 0x2e0   : > { %691 = vadd.xlane.f32.xlu1 %v690_v20 }
 0x336   : > { %v788_v24 = vpop.xlane.xlu1 %787 }
 0x337   : > { %v789_v25 = vsub.f32 %v781_v62, %v788_v24 }
 0x339   : > { %v790_v26 = vmul.f32 1.442695, %v789_v25 }
 0x33b   : > { %1463 = vpow2.f32 %v790_v26 }
 0x342   : > { %v900_v27 = vpop.xlane.xlu0 %899 }
 0x343   : > { %v901_v28 = vsub.f32 %v893_v4, %v900_v27 }
 0x345   : > { %v902_v29 = vmul.f32 1.442695, %v901_v28 }
 0x347   : > { %1465 = vpow2.f32 %v902_v29 }
 0x348   : > { %v1464_v30 = vpop.eup %1463 }
 0x349   : > { %v792_v31 = vsel %vm530_vm2, %v1464_v30, 0.0 }
 0x34a   : > { %793 = vadd.xlane.f32.xlu0 %v792_v31  ;;  %v1010_v32 = vpop.xlane.xlu0 %1009 }
 0x34b   : > { %v1011_v33 = vsub.f32 %v1003_v11, %v1010_v32 }
 0x34d   : > { %v1012_v34 = vmul.f32 1.442695, %v1011_v33 }
 0x34f   : > { %1467 = vpow2.f32 %v1012_v34 }
 0x354   : > { %v1466_v35 = vpop.eup %1465 }
 0x355   : > { %v904_v36 = vsel %vm530_vm2, %v1466_v35, 0.0 }
 0x356   : > { %905 = vadd.xlane.f32.xlu1 %v904_v36 }
 0x35c   : > { %v1468_v37 = vpop.eup %1467 }
 0x35d   : > { %v1014_v38 = vsel %vm530_vm2, %v1468_v37, 0.0 }
 0x35e   : > { %1015 = vadd.xlane.f32.xlu0 %v1014_v38 }
 0x367   : > { %911 = vrot.lane.b32.xlu1 %v630_v23, %s1552_s14 }
 0x369   : > { %v692_v39 = vpop.xlane.xlu1 %691 }
 0x36a   : > { %1469 = vrcp.f32 %v692_v39 }
 0x377   : > { %v1470_v40 = vpop.eup %1469 }
 0x378   : > { %v694_v41 = vmul.f32 %v1470_v40, %v1462_v19 }
 0x37a   : > { %v695_v42 = vpack.c.bf16 %v694_v41, %v694_v41 }
 0x37c   : > { %1353 = vmatmul.mubr.msk.bf16.vlgmr.msra.gmra.mxu1 %vm530_vm2, %v695_v42 }
 0x37d   : > { %1363 = vmatpush3.bf16.msra.mxu1 %v630_v23  ;;  %1364 = vmatprep.mubr.msk.bf16.mxu1 %vm1549_vm0, %v1548_v8 }
 0x37e   : > { %1374 = vmatprep.subr.bf16.mxu1 %v1548_v8 }
 0x3d3   : > { %v794_v43 = vpop.xlane.xlu0 %793 }
 0x3d4   : > { %1471 = vrcp.f32 %v794_v43 }
 0x3df   : > { %v906_v44 = vpop.xlane.xlu1 %905 }
 0x3e0   : > { %1473 = vrcp.f32 %v906_v44 }
 0x3e1   : > { %v1472_v45 = vpop.eup %1471 }
 0x3e2   : > { %v796_v46 = vmul.f32 %v1472_v45, %v1464_v30 }
 0x3e3   : > { %v912_v48 = vpop.permute.xlu1 %911 }
 0x3e4   : > { %v797_v47 = vpack.c.bf16 %v796_v46, %v796_v46 }
 0x3e6   : > { %1365 = vmatmul.mubr.msk.bf16.vlgmr.msra.gmra.mxu1 %vm530_vm2, %v797_v47 }
 0x3e7   : > { %v1016_v49 = vpop.xlane.xlu0 %1015  ;;  %1375 = vmatpush3.bf16.msra.mxu1 %v912_v48  ;;  %1376 = vmatprep.mubr.msk.bf16.mxu1 %vm1549_vm0, %v1548_v8 }
 0x3e8   : > { %1475 = vrcp.f32 %v1016_v49  ;;  %1386 = vmatprep.subr.bf16.mxu1 %v1548_v8 }
 0x3ed   : > { %v1474_v50 = vpop.eup %1473 }
 0x3ee   : > { %v908_v51 = vmul.f32 %v1474_v50, %v1466_v35 }
 0x3f0   : > { %v909_v52 = vpack.c.bf16 %v908_v51, %v908_v51 }
 0x3f2   : > { %1377 = vmatmul.mubr.msk.bf16.vlgmr.msra.gmra.mxu1 %vm530_vm2, %v909_v52 }
 0x3f3   : > { %1387 = vmatpush3.bf16.msra.mxu1 %v912_v48  ;;  %1388 = vmatprep.mubr.msk.bf16.mxu1 %vm1549_vm0, %v1548_v8 }
 0x3f5   : > { %v1476_v53 = vpop.eup %1475 }
 0x3f6   : > { %v1018_v54 = vmul.f32 %v1476_v53, %v1468_v37 }
 0x3f8   : > { %v1019_v55 = vpack.c.bf16 %v1018_v54, %v1018_v54 }
 0x3fa   : > { %1389 = vmatmul.mubr.msk.bf16.vlgmr.msra.gmra.mxu1 %vm530_vm2, %v1019_v55 }
 0x43c   : > { %v733_v56 = vpop.f32.mrf.mxu1 }
 0x43d   : > { %739 = vst.msk [vmem:[#allocation4] sm:$0xff] %vm637_vm3, %v733_v56 }
 0x43e   : > { %v1354_v57 = vpop.f32.mrf.mxu1 }
 0x440   : > { %v736_v58 = vpop.f32.mrf.mxu1 }
 0x442   : > { %v1355_v59 = vpop.f32.mrf.mxu1 }
 0x4a6   : > { %v835_v60 = vpop.f32.mrf.mxu1 }
 0x4a7   : > { %842 = vrot.lane.b32.xlu0 %v835_v60, %s1556_s27 }
 0x4a8   : > { %v1366_v61 = vpop.f32.mrf.mxu1 }
 0x4aa   : > { %v838_v62 = vpop.f32.mrf.mxu1 }
 0x4ac   : > { %v1367_v63 = vpop.f32.mrf.mxu1 }
 0x4b2   : > { %v951_v2 = vpop.f32.mrf.mxu1 }
 0x4b3   : > { %958 = vrot.lane.b32.xlu1 %v951_v2, %s1557_s17 }
 0x4b4   : > { %v1378_v3 = vpop.f32.mrf.mxu1 }
 0x4b6   : > { %v954_v4 = vpop.f32.mrf.mxu1 }
 0x4b8   : > { %v1379_v5 = vpop.f32.mrf.mxu1 }
 0x4ba   : > { %v1057_v6 = vpop.f32.mrf.mxu1 }
 0x4bb   : > { %1064 = vrot.lane.b32.xlu1 %v1057_v6, %s1558_s18 }
 0x4bc   : > { %v1390_v7 = vpop.f32.mrf.mxu1 }
 0x4be   : > { %v1060_v9 = vpop.f32.mrf.mxu1 }
 0x4c0   : > { %v1391_v10 = vpop.f32.mrf.mxu1 }
 0x519   : > { %v843_v11 = vpop.permute.xlu0 %842 }
 0x51a   : > { %846 = vst.msk [vmem:[#allocation4] sm:$0xff] %vm845_vm5, %v843_v11 }
 0x525   : > { %v959_v12 = vpop.permute.xlu1 %958 }
 0x526   : > { %962 = vst.msk [vmem:[#allocation4] sm:$0xff] %vm961_vm6, %v959_v12 }
 0x52d   : > { %v1065_v8 = vpop.permute.xlu1 %1064 }
 0x52e   : > { %1068 = vst.msk [vmem:[#allocation4] sm:$0xff] %vm1067_vm7, %v1065_v8 }
 0x535   : > { %v1069_v13 = vld [vmem:[#allocation4] sm:$0xff] }
 0x536   : > { %v1070_v14 = vpack.c.bf16 %v1069_v13, %v1069_v13 }
 0x538   : > { %1397 = vmatmul.mubr.msk.bf16.vlgmr.msra.gmra.mxu0 %vm418_vm1, %v1070_v14 }
 0x5f8   : > { %v1124_v15 = vpop.f32.mrf.mxu0 }
 0x5f9   : > { %1130 = vst.msk [vmem:[%s275_s21] sm:$0xff] %vm418_vm1, %v1124_v15 }
 0x5fa   : > { %v1398_v16 = vpop.f32.mrf.mxu0 }
 0x5fc   : > { %v1127_v17 = vpop.f32.mrf.mxu0 }
 0x5fe   : > { %v1399_v18 = vpop.f32.mrf.mxu0 }
 0x5ff   : > { %1523 = dma.done.wait [#allocation5 + $0x2], 128 }
 0x600   : > { %1524 = vsyncadd [#allocation5 + $0x2], 4294967168 }
 0x601   : > { %1525 = dma.done.wait [#allocation5 + $0x3], 128 }
 0x602   : > { %1526 = vsyncadd [#allocation5 + $0x3], 4294967168  ;;  %s1307_s30 = sshll.u32 %s1644_s0, 7  ;;  %s1150_s14 = sshll.u32 %s275_s21, 4  ;;  %s1151_s14 = int_to_ptr.vmem [resolvable:$true] %s1150_s14 }
 0x603   : > { %s1148_s19 = scalar_lea.hbm %s1849_s9, %s1307_s30  ;;  %s1865_s24 = sand.u32 1, %s1537_s20  }
 0x604   : > { %s1137_s29 = scalar_lea.sflag [#allocation8], %s1865_s24  ;;  %s1477_s27 = scalar_lea.vmem %s1151_s14, 128 }
 0x605   : > { %p1478_p11 = scmp.ne.s32.totalorder %s1151_s14, %s1477_s27  ;;  %s1559_s13 = smov [#allocation7]  }
 0x606   : > { %s1481_s26 = sshll.u32 %s1559_s13, 4  ;;  %s1482_s26 = int_to_ptr.vmem [resolvable:$false] %s1481_s26 }
 0x607   : > { %p1479_p12 = pnand %p1478_p11, %p1661_p5  ;;  %s1483_s15 = scalar_lea.vmem %s1482_s26, 256 }
 0x608   : > { %p1484_p0 = scmp.lt.s32.totalorder %s1151_s14, %s1482_s26  ;;  %p1485_p1 = scmp.lt.s32.totalorder %s1483_s15, %s1477_s27 }
 0x609   : > { %p1480_p13 = pneg %p1479_p12 }
 0x60a   : > { %p1486_p2 = por %p1485_p1, %p1484_p0 }
 0x60c   : > { %p1487_p3 = pnand %p1486_p2, %p1480_p13 }
 0x60e   : > { %1490 = shalt.err (!%p1487_p3)
}
 0x60f   : > { %s1491_s0 = scalar_lea.hbm %s1148_s19, 128  ;;  %s1495_s16 = scalar_lea.hbm %s1849_s9, 256 }
 0x610   : > { %p1492_p4 = scmp.ne.s32.totalorder %s1148_s19, %s1491_s0  ;;  %p1496_p9 = scmp.lt.s32.totalorder %s1148_s19, %s1849_s9 }
 0x611   : > { %p1497_p10 = scmp.lt.s32.totalorder %s1495_s16, %s1491_s0 }
 0x612   : > { %p1493_p7 = pnand %p1492_p4, %p1661_p5 }
 0x613   : > { %p1498_p11 = por %p1497_p10, %p1496_p9 }
 0x614   : > { %p1494_p8 = pneg %p1493_p7 }
 0x616   : > { %p1499_p12 = pnand %p1498_p11, %p1494_p8 }
 0x618   : > { %1502 = shalt.err (!%p1499_p12)
}
 0x619   : > { %1400 = dma.vmem_to_hbm [thread:$0]  (%p1661_p5), %s1151_s14, 128, %s1148_s19, %s1137_s29  }
 0x61a PF: > { %s1866_s30 = sld [smem:[#allocation18_spill]]  ;;  %p1406_p13 = scmp.ge.s32.totalorder %s1545_s22, 2 }
 0x61c   : > { %p1403_p0 = pnand %p1406_p13, %p1665_p6 }
 0x61e   : > { %p1404_p1 = pneg %p1403_p0 }
 0x620   : > { %s1162_s25 = sand.u32 1, %s1866_s30  }
 0x621   : > { %s1163_s24 = scalar_lea.sflag [#allocation8], %s1162_s25 }
 0x622   : > { %1528 = dma.done.wait (%p1404_p1), %s1163_s24, 128  }
 0x623   : > { %1530 = vsyncadd (%p1404_p1), %s1163_s24, 4294967168  ;;  %s1868_s22 = sld [smem:[#allocation20_spill]]  ;;  %s1871_s19 = smov %s1537_s20 }
 0x624   : > { %s1869_s27 = sld [smem:[#allocation19_spill]] }
 0x625   : > { %s1870_s21 = sld [smem:[#allocation21_spill]] }
 0x629   : > { %p23_p2 = scmp.ge.s32.totalorder %s1868_s22, 4  }
 0x62a   : > { %s1872_s20 = smov %s1869_s27 }
 0x62b   :  { %25 = sbr.rel (!%p23_p2) target bundleno = 5 (0x5), region = 263 }
 0x630   :  { %1168 = vsyncpa [#allocation8], 1 }
 0x631   :  { %1170 = vsyncpa [#allocation8 + $0x1], 1 }
 0x632   :  { %1171 = vsyncmov [#allocation5] }
 0x635   :  { %s1172_s28 = vpop.sfrf %1171 }
 0x636   :  { %p1310_p5 = scmp.ne.s32.totalorder %s1172_s28, 0 }
 0x638   :  { %1176 = shalt.err (%p1310_p5)  }
 0x639   :  { %1178 = vsyncmov [#allocation5 + $0x1] }
 0x63c   :  { %s1179_s14 = vpop.sfrf %1178 }
 0x63d   :  { %p1311_p6 = scmp.ne.s32.totalorder %s1179_s14, 0 }
 0x63f   :  { %1183 = shalt.err (%p1311_p6)  }
 0x640   :  { %1185 = vsyncmov [#allocation5 + $0x2] }
 0x643   :  { %s1186_s29 = vpop.sfrf %1185 }
 0x644   :  { %p1312_p3 = scmp.ne.s32.totalorder %s1186_s29, 0 }
 0x646   :  { %1190 = shalt.err (%p1312_p3)  }
 0x647   :  { %1192 = vsyncmov [#allocation5 + $0x3] }
 0x64a   :  { %s1193_s13 = vpop.sfrf %1192 }
 0x64b   :  { %p1313_p4 = scmp.ne.s32.totalorder %s1193_s13, 0 }
 0x64d   :  { %1197 = shalt.err (%p1313_p4)  }

</bundles_post_ra>
